<compile_context>
chip_gen: v7x
topology: tpu7x:2x2x1
jax: 0.10.0
libtpu: 0.0.40
codegen_flags: <defaults>
</compile_context>

<pallas_src>
import functools

import jax
import jax.numpy as jnp
from jax.experimental import pallas as pl
from jax.experimental.pallas import tpu as pltpu


def _round_up(x, m):
    return ((x + m - 1) // m) * m


def _vmem_budget_bytes():
    """Generation-aware per-call VMEM budget (~3/4 of physical VMEM)."""
    cap = 64 * 1024 * 1024  # conservative default (v7x-sized)
    try:
        info = pltpu.get_tpu_info()
        c = getattr(info, "vmem_capacity_bytes", None)
        if c:
            cap = int(c)
    except Exception:
        pass
    return (cap * 3) // 4


_VMEM_LIMIT = _vmem_budget_bytes()


def _pick_tile(n, preferred, align):
    """Largest tile <= preferred that divides n and is a multiple of `align`,
    falling back to the full dim (always a legal block shape).  Only used for
    the small single-shot kernels (standardization / projection); the
    aggregation kernel pads instead, so its A tile never degenerates to (N,N)."""
    if n <= preferred:
        return n
    t = (preferred // align) * align
    while t >= align:
        if n % t == 0:
            return t
        t -= align
    return n


# --------------------------------------------------------------------------
# Kernel 1: per-feature standardization (two-pass tiled reduction + apply)
# --------------------------------------------------------------------------

def _mean_kernel(x_ref, mean_ref, sum_ref, *, n_total):
    i = pl.program_id(0)

    @pl.when(i == 0)
    def _():
        sum_ref[...] = jnp.zeros_like(sum_ref)

    sum_ref[...] += jnp.sum(x_ref[...], axis=0, keepdims=True)

    @pl.when(i == pl.num_programs(0) - 1)
    def _():
        mean_ref[...] = sum_ref[...] * (1.0 / n_total)


def _istd_kernel(x_ref, mean_ref, istd_ref, sq_ref, *, n_total):
    i = pl.program_id(0)

    @pl.when(i == 0)
    def _():
        sq_ref[...] = jnp.zeros_like(sq_ref)

    d = x_ref[...] - mean_ref[...]
    sq_ref[...] += jnp.sum(d * d, axis=0, keepdims=True)

    @pl.when(i == pl.num_programs(0) - 1)
    def _():
        istd_ref[...] = jax.lax.rsqrt(sq_ref[...] * (1.0 / n_total) + 1e-6)


def _std_apply_kernel(x_ref, mean_ref, istd_ref, o_ref):
    o_ref[...] = (x_ref[...] - mean_ref[...]) * istd_ref[...]


def pallas_standardize(x):
    """Per-feature z-score standardization (two-pass: mean, then centered
    variance) -- runs once on the raw input features."""
    N, F = x.shape
    tm = _pick_tile(N, 2048, 8)
    grid = (N // tm,)

    row_spec = pl.BlockSpec((tm, F), lambda i: (i, 0))
    vec_spec = pl.BlockSpec((1, F), lambda i: (0, 0))

    mean = pl.pallas_call(
        functools.partial(_mean_kernel, n_total=float(N)),
        out_shape=jax.ShapeDtypeStruct((1, F), jnp.float32),
        grid_spec=pltpu.PrefetchScalarGridSpec(
            num_scalar_prefetch=0, grid=grid,
            in_specs=[row_spec], out_specs=vec_spec,
            scratch_shapes=[pltpu.VMEM((1, F), jnp.float32)]),
        compiler_params=pltpu.CompilerParams(
            dimension_semantics=("arbitrary",), vmem_limit_bytes=_VMEM_LIMIT),
    )(x)

    istd = pl.pallas_call(
        functools.partial(_istd_kernel, n_total=float(N)),
        out_shape=jax.ShapeDtypeStruct((1, F), jnp.float32),
        grid_spec=pltpu.PrefetchScalarGridSpec(
            num_scalar_prefetch=0, grid=grid,
            in_specs=[row_spec, vec_spec], out_specs=vec_spec,
            scratch_shapes=[pltpu.VMEM((1, F), jnp.float32)]),
        compiler_params=pltpu.CompilerParams(
            dimension_semantics=("arbitrary",), vmem_limit_bytes=_VMEM_LIMIT),
    )(x, mean)

    return pl.pallas_call(
        _std_apply_kernel,
        out_shape=jax.ShapeDtypeStruct((N, F), jnp.float32),
        grid=grid,
        in_specs=[pl.BlockSpec((tm, F), lambda i: (i, 0)),
                  pl.BlockSpec((1, F), lambda i: (0, 0)),
                  pl.BlockSpec((1, F), lambda i: (0, 0))],
        out_specs=pl.BlockSpec((tm, F), lambda i: (i, 0)),
        compiler_params=pltpu.CompilerParams(
            dimension_semantics=("parallel",), vmem_limit_bytes=_VMEM_LIMIT),
    )(x, mean, istd)


# --------------------------------------------------------------------------
# Kernel 2: message-passing aggregation (A_sum @ X) + fused row-L2 normalize
#   grid = (row tiles [parallel], adjacency-K tiles [arbitrary])
#   X is VMEM-resident (fetch-once); only the bf16 adjacency is streamed.
# --------------------------------------------------------------------------

def _agg_norm_resident_kernel(a_ref, x_ref, o_ref, acc_ref, *, tk):
    k = pl.program_id(1)

    @pl.when(k == 0)
    def _():
        acc_ref[...] = jnp.zeros_like(acc_ref)

    ks = pl.multiple_of(k * tk, tk)
    acc_ref[...] += jnp.dot(a_ref[...], x_ref[pl.ds(ks, tk), :],
                            preferred_element_type=jnp.float32)

    @pl.when(k == pl.num_programs(1) - 1)
    def _():
        y = acc_ref[...]
        inv_nrm = jax.lax.rsqrt(jnp.sum(y * y, axis=1, keepdims=True) + 1e-12)
        o_ref[...] = (y * inv_nrm).astype(o_ref.dtype)


def _agg_norm_streamed_kernel(a_ref, x_ref, o_ref, acc_ref):
    k = pl.program_id(1)

    @pl.when(k == 0)
    def _():
        acc_ref[...] = jnp.zeros_like(acc_ref)

    acc_ref[...] += jnp.dot(a_ref[...], x_ref[...],
                            preferred_element_type=jnp.float32)

    @pl.when(k == pl.num_programs(1) - 1)
    def _():
        y = acc_ref[...]
        inv_nrm = jax.lax.rsqrt(jnp.sum(y * y, axis=1, keepdims=True) + 1e-12)
        o_ref[...] = (y * inv_nrm).astype(o_ref.dtype)


def _choose_agg_tiles(n, fpad, budget):
    """Pick (tm, tk, x_resident): tm multiple of 16 (bf16 sublanes), tk
    multiple of 128 (lanes), sized against an explicit VMEM budget."""
    tm = min(_round_up(n, 16), 1024)
    tk = min(_round_up(n, 128), 2048)

    def x_resident_bytes(tk_):
        # worst case: the pipeline double-buffers even a fetch-once input
        return 2 * _round_up(n, tk_) * fpad * 2

    def total_bytes(tm_, tk_, resident):
        a = 2 * tm_ * tk_ * 2                       # bf16 A, double buffered
        out = 2 * tm_ * fpad * 4                    # f32 out, double buffered
        acc = tm_ * fpad * 4                        # f32 accumulator scratch
        xb = x_resident_bytes(tk_) if resident else 2 * tk_ * fpad * 2
        return a + out + acc + xb

    resident = x_resident_bytes(tk) <= budget // 2
    while total_bytes(tm, tk, resident) > budget:
        if tk > 128:
            tk = max(128, ((tk // 2) // 128) * 128)
        elif tm > 16:
            tm = max(16, ((tm // 2) // 16) * 16)
        else:
            break
        resident = x_resident_bytes(tk) <= budget // 2

    # Soft preference: even row-tile count so the "parallel" axis splits
    # cleanly across the two TensorCores on v7x megacore parts.
    rows = _round_up(n, tm) // tm
    if rows > 1 and rows % 2 == 1 and tm % 32 == 0:
        tm //= 2
    return tm, tk, resident


def make_agg_norm_fn(a_sum, feat_dim):
    """Build the aggregation (+ fused L2 normalize) step for a fixed adjacency.
    Pads + casts the adjacency to bf16 ONCE (reused every step)."""
    n = a_sum.shape[0]
    fpad = _round_up(max(feat_dim, 1), 128)    # lane-dense X / output
    tm, tk, x_resident = _choose_agg_tiles(n, fpad, _VMEM_LIMIT)
    np_r = _round_up(n, tm)
    np_c = _round_up(n, tk)

    a_pad = jnp.zeros((np_r, np_c), jnp.bfloat16)
    a_pad = a_pad.at[:n, :n].set(a_sum.astype(jnp.bfloat16))
    grid = (np_r // tm, np_c // tk)

    if x_resident:
        kernel = functools.partial(_agg_norm_resident_kernel, tk=tk)
        x_spec = pl.BlockSpec((np_c, fpad), lambda i, k: (0, 0))   # fetch-once
    else:
        kernel = _agg_norm_streamed_kernel
        x_spec = pl.BlockSpec((tk, fpad), lambda i, k: (k, 0))

    call = pl.pallas_call(
        kernel,
        out_shape=jax.ShapeDtypeStruct((np_r, fpad), jnp.float32),
        grid_spec=pltpu.PrefetchScalarGridSpec(
            num_scalar_prefetch=0,
            grid=grid,
            in_specs=[pl.BlockSpec((tm, tk), lambda i, k: (i, k)), x_spec],
            out_specs=pl.BlockSpec((tm, fpad), lambda i, k: (i, 0)),
            scratch_shapes=[pltpu.VMEM((tm, fpad), jnp.float32)]),
        compiler_params=pltpu.CompilerParams(
            dimension_semantics=("parallel", "arbitrary"),
            vmem_limit_bytes=_VMEM_LIMIT),
    )

    def agg(x):
        nf = x.shape[1]
        xp = jnp.zeros((np_c, fpad), jnp.bfloat16)
        xp = xp.at[:n, :nf].set(x.astype(jnp.bfloat16))
        out = call(a_pad, xp)
        return out[:n, :nf]

    return agg


# --------------------------------------------------------------------------
# Kernel 3: SVD compression projection (X @ Vk), row-tiled
# --------------------------------------------------------------------------

def _matmul_kernel(a_ref, b_ref, o_ref):
    o_ref[...] = jnp.dot(a_ref[...], b_ref[...],
                         preferred_element_type=jnp.float32)


def pallas_matmul(a, b):
    M, K = a.shape
    K2, Nc = b.shape
    assert K == K2
    tm = _pick_tile(M, 1024, 8)
    grid = (M // tm,)
    # NOTE: Nc (compression rank, e.g. 4) is tiny; this matmul is a negligible
    # fraction of per-step work vs. the A @ X aggregation, so the lane-sparse
    # (tm, Nc) output is accepted here.
    return pl.pallas_call(
        _matmul_kernel,
        out_shape=jax.ShapeDtypeStruct((M, Nc), jnp.float32),
        grid=grid,
        in_specs=[pl.BlockSpec((tm, K), lambda i: (i, 0)),
                  pl.BlockSpec((K, Nc), lambda i: (0, 0))],
        out_specs=pl.BlockSpec((tm, Nc), lambda i: (i, 0)),
        compiler_params=pltpu.CompilerParams(
            dimension_semantics=("parallel",), vmem_limit_bytes=_VMEM_LIMIT),
    )(a, b)


# --------------------------------------------------------------------------
# ACC forward (plain-JAX glue around the Pallas kernels)
# --------------------------------------------------------------------------

def get_emb_dims(max_dim, min_add_dim, num_nodes, num_steps):
    dim_per_step = min(max(max_dim // (num_steps + 1), min_add_dim), num_nodes)
    return dim_per_step, [dim_per_step] * num_steps


def compress(x, k):
    # ACCCompressor.compress: keep top-k right singular vectors.
    # TODO(synk): the SVD factorization itself has no Pallas equivalent; it
    # runs in plain JAX.  The projection matmul (the O(N*F*k) part) is Pallas.
    _, _, vt = jnp.linalg.svd(x, full_matrices=False)
    vk = jnp.transpose(vt[:k, :])            # (F, k)
    return pallas_matmul(x, vk)              # (N, k)


def acc_forward(x, adj_ws2t_t, adj_wt2s, num_steps, *, max_dim, min_add_dim):
    # TODO(synk): torch_sparse.SparseTensor SpMM is represented as a dense
    # row-normalized adjacency matmul inside the Pallas aggregation kernel
    # (a block-sparse variant via scalar prefetch could skip all-zero tiles).
    init_dim, emb_dims = get_emb_dims(max_dim, min_add_dim, x.shape[0], num_steps)

    # Merge the two directional adjacencies once (A1@X + A2@X == (A1+A2)@X);
    # the fused row-L2 normalize makes any global scale irrelevant.
    if adj_wt2s is None:
        a_sum = adj_ws2t_t
    else:
        a_sum = adj_ws2t_t + adj_wt2s

    feat_dim = max([init_dim] + emb_dims)
    agg_norm = make_agg_norm_fn(a_sum, feat_dim=feat_dim)

    x = pallas_standardize(x)          # initial_feature_standardization
    x = compress(x, init_dim)          # initial SVD compression

    x_new = x
    embeddings = [x]
    for k in emb_dims:
        x_new = agg_norm(x_new)        # MsgAggStep (fused row-L2 normalize)
        x_new = compress(x_new, k)     # SVD compression
        embeddings.append(x_new)

    # TODO(synk): the concat stays in plain-JAX glue (each embedding depends on
    # a plain-JAX SVD of the previous one, so a single slab kernel cannot
    # produce them in one pallas_call).
    return jnp.concatenate(embeddings, axis=1)


# --------------------------------------------------------------------------
# main
# --------------------------------------------------------------------------

if __name__ == "__main__":
    key = jax.random.PRNGKey(0)
    k_x, k_a = jax.random.split(key)

    N, F = 64, 32          # num_nodes, feature dim
    num_steps = 3
    max_dim, min_add_dim = 16, 2   # -> dim_per_step = 4, output (64, 16)

    x = jax.random.normal(k_x, (N, F), dtype=jnp.float32)

    # deterministic synthetic graph: sparse-ish dense adjacency, row-normalized
    a_raw = (jax.random.uniform(k_a, (N, N)) < 0.1).astype(jnp.float32)
    a_raw = a_raw + jnp.eye(N, dtype=jnp.float32)          # self loops
    deg = jnp.sum(a_raw, axis=1, keepdims=True)
    adj = a_raw / jnp.maximum(deg, 1.0)                    # A (target <- source)
    adj_ws2t_t = adj                                       # transposed s2t adjacency
    adj_wt2s = jnp.transpose(adj)                          # reverse direction

    out = acc_forward(x, adj_ws2t_t, adj_wt2s, num_steps,
                      max_dim=max_dim, min_add_dim=min_add_dim)
    out = jax.block_until_ready(out)

    expected_cols = (num_steps + 1) * min(max(max_dim // (num_steps + 1),
                                              min_add_dim), N)
    assert out.shape == (N, expected_cols), out.shape
    assert bool(jnp.all(jnp.isfinite(out)))
    print("KERNEL_OK")
</pallas_src>

<mosaic_0001>
module attributes {stable_mosaic.version = 11 : i64} {
  func.func @_mean_kernel(%arg0: i32, %arg1: memref<64x32xf32, #tpu.memory_space<vmem>>, %arg2: memref<1x32xf32, #tpu.memory_space<vmem>>, %arg3: memref<1x32xf32, #tpu.memory_space<vmem>>) attributes {dimension_semantics = [#tpu.dimension_semantics<arbitrary>], iteration_bounds = array<i64: 1>, scalar_prefetch = 0 : i64, scratch_operands = 1 : i64, tpu.core_type = #tpu.core_type<tc>, window_params = [{transform_indices = @transform_0, window_bounds = array<i64: 64, 32>}, {pipeline_mode = #tpu.pipeline_mode<synchronous>, transform_indices = @transform_1, window_bounds = array<i64: 1, 32>}]} {
    %c0_i32 = arith.constant 0 : i32
    %0 = arith.cmpi eq, %arg0, %c0_i32 : i32
    %1 = arith.extui %0 : i1 to i32
    %c0_i32_0 = arith.constant 0 : i32
    %2 = arith.cmpi ne, %1, %c0_i32_0 : i32
    scf.if %2 {
      %cst_8 = arith.constant 0.000000e+00 : f32
      %12 = vector.broadcast %cst_8 : f32 to vector<1x32xf32>
      %c0_9 = arith.constant 0 : index
      %c0_10 = arith.constant 0 : index
      %13 = vector.load %arg3[%c0_9, %c0_10] : memref<1x32xf32, #tpu.memory_space<vmem>>, vector<1x32xf32>
      tpu.vector_store %arg3[%c0_9, %c0_10], %12 {strides = array<i32>} : memref<1x32xf32, #tpu.memory_space<vmem>>, vector<1x32xf32>,
    } else {
    }
    %c0 = arith.constant 0 : index
    %c0_1 = arith.constant 0 : index
    %3 = vector.load %arg3[%c0, %c0_1] : memref<1x32xf32, #tpu.memory_space<vmem>>, vector<1x32xf32>
    %c0_2 = arith.constant 0 : index
    %c0_3 = arith.constant 0 : index
    %4 = vector.load %arg1[%c0_2, %c0_3] : memref<64x32xf32, #tpu.memory_space<vmem>>, vector<64x32xf32>
    %cst = arith.constant dense<0.000000e+00> : vector<32xf32>
    %5 = vector.multi_reduction <add>, %4, %cst [0] : vector<64x32xf32> to vector<32xf32>
    %6 = vector.shape_cast %5 : vector<32xf32> to vector<1x32xf32>
    %7 = arith.addf %3, %6 : vector<1x32xf32>
    %c0_4 = arith.constant 0 : index
    %c0_5 = arith.constant 0 : index
    %8 = vector.load %arg3[%c0_4, %c0_5] : memref<1x32xf32, #tpu.memory_space<vmem>>, vector<1x32xf32>
    tpu.vector_store %arg3[%c0_4, %c0_5], %7 {strides = array<i32>} : memref<1x32xf32, #tpu.memory_space<vmem>>, vector<1x32xf32>,
    %c0_i32_6 = arith.constant 0 : i32
    %9 = arith.cmpi eq, %arg0, %c0_i32_6 : i32
    %10 = arith.extui %9 : i1 to i32
    %c0_i32_7 = arith.constant 0 : i32
    %11 = arith.cmpi ne, %10, %c0_i32_7 : i32
    scf.if %11 {
      %c0_8 = arith.constant 0 : index
      %c0_9 = arith.constant 0 : index
      %12 = vector.load %arg3[%c0_8, %c0_9] : memref<1x32xf32, #tpu.memory_space<vmem>>, vector<1x32xf32>
      %cst_10 = arith.constant 1.562500e-02 : f32
      %13 = vector.broadcast %cst_10 : f32 to vector<1x32xf32>
      %14 = arith.mulf %12, %13 : vector<1x32xf32>
      %c0_11 = arith.constant 0 : index
      %c0_12 = arith.constant 0 : index
      %15 = vector.load %arg2[%c0_11, %c0_12] : memref<1x32xf32, #tpu.memory_space<vmem>>, vector<1x32xf32>
      tpu.vector_store %arg2[%c0_11, %c0_12], %14 {strides = array<i32>} : memref<1x32xf32, #tpu.memory_space<vmem>>, vector<1x32xf32>,
    } else {
    }
    return
  }
  func.func @transform_0(%arg0: i32) -> (i32, i32) {
    %c0_i32 = arith.constant 0 : i32
    %c0_i32_0 = arith.constant 0 : i32
    return %arg0, %c0_i32 : i32, i32
  }
  func.func @transform_1(%arg0: i32) -> (i32, i32) {
    %c0_i32 = arith.constant 0 : i32
    %c0_i32_0 = arith.constant 0 : i32
    %c0_i32_1 = arith.constant 0 : i32
    return %c0_i32, %c0_i32_0 : i32, i32
  }
}

</mosaic_0001>

<bundles_post_ra>
// kernel: tpu_custom_call.1
= control target key start
LH: loop header
LB: loop body
LE: loop exit
PB: predicated region body
PF: predicated region fallthrough
CT: control target
= control target key end

     0   :  { %vm13_vm0 = vcmask 253952   ;;  %vm24_vm1 = vcmask 261120   ;;  %v95_v3 = vmov 0.0   ;;  %s154_s0 = inlined_call_operand.vmem [shape: f32[64,32], index: 0, kind: input, shape index: {}]   ;;  %s155_s1 = inlined_call_operand.hbm [shape: f32[1,32], index: 1, kind: output, shape index: {}]  }
   0x1   :  { %v16_v0 = vld [vmem:[%s154_s0] sm:$0xff]  ;;  %v17_v1 = vld [vmem:[%s154_s0 + $0x8] sm:$0xff]  ;;  %v18_v2 = vld [vmem:[%s154_s0 + $0x10] sm:$0xff]  ;;  %14 = vst.msk [vmem:[#allocation2] sm:$0x1] %vm13_vm0, %v95_v3 }
   0x2   :  { %v19_v4 = vld [vmem:[%s154_s0 + $0x18] sm:$0xff]  ;;  %v25_v5 = vsel %vm24_vm1, %v16_v0, 0.0  ;;  %v26_v6 = vsel %vm24_vm1, %v17_v1, 0.0  ;;  %v28_v7 = vsel %vm24_vm1, %v18_v2, 0.0  ;;  %v20_v8 = vld [vmem:[%s154_s0 + $0x20] sm:$0xff] }
   0x3   :  { %v27_v9 = vadd.f32 %v26_v6, %v25_v5  ;;  %v30_v10 = vsel %vm24_vm1, %v19_v4, 0.0 }
   0x4   :  { %6 = vsyncpa [#allocation4], 0  ;;  %v21_v11 = vld [vmem:[%s154_s0 + $0x28] sm:$0xff]  ;;  %v32_v13 = vsel %vm24_vm1, %v20_v8, 0.0  ;;  %v22_v14 = vld [vmem:[%s154_s0 + $0x30] sm:$0xff]  ;;  %s96_s22 = smov [#allocation3]  }
   0x5   :  { %v29_v12 = vadd.f32 %v28_v7, %v27_v9  ;;  %v34_v16 = vsel %vm24_vm1, %v21_v11, 0.0  ;;  %v23_v17 = vld [vmem:[%s154_s0 + $0x38] sm:$0xff]  ;;  %v36_v19 = vsel %vm24_vm1, %v22_v14, 0.0  ;;  %s61_s0 = sshll.u32 %s96_s22, 4  ;;  %s62_s0 = int_to_ptr.vmem [resolvable:$true] %s61_s0 }
   0x6   :  { %v38_v21 = vsel %vm24_vm1, %v23_v17, 0.0  ;;  %s71_s23 = scalar_lea.vmem %s62_s0, 16  ;;  %s75_s24 = scalar_lea.vmem %s62_s0, 32 }
   0x7   :  { %v31_v15 = vadd.f32 %v30_v10, %v29_v12  ;;  %p72_p0 = scmp.ne.s32.totalorder %s62_s0, %s71_s23  ;;  %p76_p1 = scmp.lt.s32.totalorder %s62_s0, %s62_s0 }
   0x8   :  { %v15_v29 = vld [vmem:[#allocation2] sm:$0x1]  ;;  %p77_p2 = scmp.lt.s32.totalorder %s75_s24, %s71_s23 }
   0x9   :  { %v33_v18 = vadd.f32 %v32_v13, %v31_v15 }
   0xa   :  { %p78_p3 = por %p77_p2, %p76_p1 }
   0xb   :  { %v35_v20 = vadd.f32 %v34_v16, %v33_v18 }
   0xc   :  { %p79_p4 = pnand %p78_p3, %p72_p0 }
   0xd   :  { %v37_v22 = vadd.f32 %v36_v19, %v35_v20 }
   0xf   :  { %v39_v23 = vadd.f32 %v38_v21, %v37_v22 }
  0x11   :  { %v40_v24 = vrot.slane %v39_v23, 4 }
  0x13   :  { %v41_v25 = vadd.f32 %v40_v24, %v39_v23 }
  0x15   :  { %v42_v26 = vrot.slane %v41_v25, 2 }
  0x17   :  { %v43_v27 = vadd.f32 %v42_v26, %v41_v25 }
  0x19   :  { %v44_v28 = vrot.slane %v43_v27, 1 }
  0x1b   :  { %v45_v30 = vadd.f32 %v44_v28, %v43_v27 }
  0x1d   :  { %v46_v31 = vadd.f32 %v45_v30, %v15_v29 }
  0x1f   :  { %48 = vst.msk [vmem:[#allocation2] sm:$0x1] %vm13_vm0, %v46_v31 }
  0x26   :  { %v52_v32 = vld [vmem:[#allocation2] sm:$0x1] }
  0x27   :  { %v53_v33 = vmul.f32 0.015625, %v52_v32 }
  0x29   :  { %54 = vst.msk [vmem:[#allocation3] sm:$0x1] %vm13_vm0, %v53_v33 }
  0x2a   :  { %82 = shalt.err (!%p79_p4)
}
  0x2b   :  { %s83_s27 = scalar_lea.hbm %s155_s1, 16 }
  0x2c   :  { %p84_p5 = scmp.ne.s32.totalorder %s155_s1, %s83_s27  ;;  %p87_p6 = scmp.lt.u32.totalorder %s83_s27, %s155_s1 }
  0x2e   :  { %p89_p7 = pnand %p87_p6, %p84_p5 }
  0x30   :  { %92 = shalt.err (!%p89_p7)
}
  0x31   :  { %64 = dma.vmem_to_hbm [thread:$0]  %s62_s0, 16, %s155_s1, [#allocation4]  }
  0x32   :  { %93 = dma.done.wait [#allocation4], 16  }
  0x33   :  { %94 = vsyncadd [#allocation4], 4294967280 }
  0x34   :  { %68 = vsyncpa [#allocation4], 1 }

</bundles_post_ra>
